<compile_context>
chip_gen: v6e
topology: v6e:2x2x1
jax: 0.10.0
libtpu: 0.0.40
codegen_flags: <defaults>
</compile_context>

<pallas_src>
import math

import jax
import jax.numpy as jnp
from jax.experimental import pallas as pl
from jax.experimental.pallas import tpu as pltpu

LANE = 128


def _round_up(x, m):
    return ((x + m - 1) // m) * m


def _pad2(x, rows, cols):
    return jnp.pad(x, ((0, rows - x.shape[0]), (0, cols - x.shape[1])))


# ---------------- fused Pallas kernel: one grid step == one graph ----------------

def make_fused_kernel(num_layers):
    def kernel(*refs):
        a_ref, x_ref = refs[0], refs[1]
        conv_wt = refs[2:2 + num_layers]                     # each [Fp|Hp, Hp]  bf16
        conv_b = refs[2 + num_layers:2 + 2 * num_layers]     # each [1, Hp]      f32
        (jk_wt_ref, jk_b_ref, w1t_ref, b1_ref,
         w2t_ref, b2_ref, o_ref) = refs[2 + 2 * num_layers:]

        a = a_ref[0]                    # [n, n]  bf16 (this graph's normalized adjacency)
        h = x_ref[0]                    # [n, Fp] bf16
        n = a.shape[0]
        hp = jk_b_ref.shape[-1]

        jk_acc = jnp.zeros((n, hp), jnp.float32)
        for l in range(num_layers):
            # GCNConv: A_hat @ (h @ W^T) + b, then ReLU (dropout = identity in eval)
            xw = jnp.dot(h, conv_wt[l][...], preferred_element_type=jnp.float32)
            agg = jnp.dot(a, xw.astype(jnp.bfloat16), preferred_element_type=jnp.float32)
            h_f32 = jnp.maximum(agg + conv_b[l][...], 0.0)
            h = h_f32.astype(jnp.bfloat16)
            # jk='cat' + Linear(L*H -> H), accumulated slice-by-slice (no concat buffer)
            jk_acc = jk_acc + jnp.dot(h, jk_wt_ref[l], preferred_element_type=jnp.float32)

        jk_out = jk_acc + jk_b_ref[...]                       # [n, Hp] f32
        # global_add_pool over this graph's nodes
        emb = jnp.sum(jk_out, axis=0, keepdims=True)          # [1, Hp] f32

        # MLP head: Linear (with BN folded in) -> ReLU -> Linear  (dropout = identity)
        y = jnp.dot(emb.astype(jnp.bfloat16), w1t_ref[...],
                    preferred_element_type=jnp.float32) + b1_ref[...]
        y = jnp.maximum(y, 0.0)
        out = jnp.dot(y.astype(jnp.bfloat16), w2t_ref[...],
                      preferred_element_type=jnp.float32) + b2_ref[...]
        o_ref[0] = out                                        # [1, Op] f32

    return kernel


def _const_spec(shape):
    nd = len(shape)
    return pl.BlockSpec(shape, lambda g, _nd=nd: (0,) * _nd)


def gcn_forward(prepped, a_blocks, x_blocks, out_dim):
    """a_blocks: [G, n, n] bf16, x_blocks: [G, n, Fp] bf16 -> [G, out_dim] f32."""
    num_layers = len(prepped["conv_wt"])
    g_count, n, fp = x_blocks.shape
    op = prepped["b2"].shape[-1]

    args = ([a_blocks, x_blocks]
            + list(prepped["conv_wt"]) + list(prepped["conv_b"])
            + [prepped["jk_wt"], prepped["jk_b"],
               prepped["w1t"], prepped["b1"],
               prepped["w2t"], prepped["b2"]])

    in_specs = ([pl.BlockSpec((1, n, n), lambda g: (g, 0, 0)),
                 pl.BlockSpec((1, n, fp), lambda g: (g, 0, 0))]
                + [_const_spec(a.shape) for a in args[2:]])

    out = pl.pallas_call(
        make_fused_kernel(num_layers),
        out_shape=jax.ShapeDtypeStruct((g_count, 1, op), jnp.float32),
        grid=(g_count,),
        in_specs=in_specs,
        out_specs=pl.BlockSpec((1, 1, op), lambda g: (g, 0, 0)),
        compiler_params=pltpu.CompilerParams(
            dimension_semantics=("parallel",),        # shard graphs over TCs on v7x
            vmem_limit_bytes=48 * 1024 * 1024,        # explicit budget, fits v7x's 64 MiB
        ),
    )(*args)
    return out[:, 0, :out_dim]


# ---------------- parameter init (deterministic, synthetic, torch layouts) ----------------

def glorot(key, shape):
    fan_out, fan_in = shape
    limit = math.sqrt(6.0 / (fan_in + fan_out))
    return jax.random.uniform(key, shape, jnp.float32, -limit, limit)


def init_params(key, input_dim, hidden_dim, out_dim, num_layers):
    keys = jax.random.split(key, num_layers + 3)
    p = {}
    conv = []
    fin = input_dim
    for l in range(num_layers):
        w = glorot(keys[l], (hidden_dim, fin))                # [out, in] torch Linear layout
        conv.append((w, jnp.zeros((hidden_dim,), jnp.float32)))
        fin = hidden_dim
    p["conv"] = conv
    p["jk_w"] = glorot(keys[num_layers], (hidden_dim, num_layers * hidden_dim))
    p["jk_b"] = jnp.zeros((hidden_dim,), jnp.float32)
    p["mlp_w1"] = glorot(keys[num_layers + 1], (hidden_dim, hidden_dim))
    p["mlp_b1"] = jnp.zeros((hidden_dim,), jnp.float32)
    p["bn_gamma"] = jnp.ones((hidden_dim,), jnp.float32)
    p["bn_beta"] = jnp.zeros((hidden_dim,), jnp.float32)
    p["bn_mean"] = jnp.zeros((hidden_dim,), jnp.float32)
    p["bn_var"] = jnp.ones((hidden_dim,), jnp.float32)
    p["mlp_w2"] = glorot(keys[num_layers + 2], (out_dim, hidden_dim))
    p["mlp_b2"] = jnp.zeros((out_dim,), jnp.float32)
    return p


def prepare_padded_params(params, input_dim, hidden_dim, out_dim, num_layers, eps=1e-5):
    """Pad lane dims to 128, pre-transpose weights, cast matmul operands to bf16,
    fold eval-mode BatchNorm into the first MLP linear."""
    fp = _round_up(input_dim, LANE)
    hp = _round_up(hidden_dim, LANE)
    op = _round_up(out_dim, LANE)

    prepped = {"conv_wt": [], "conv_b": []}
    fin_p = fp
    for w, b in params["conv"]:                               # w: [H, fin], b: [H]
        prepped["conv_wt"].append(_pad2(w.T, fin_p, hp).astype(jnp.bfloat16))
        prepped["conv_b"].append(_pad2(b.reshape(1, -1), 1, hp))   # f32
        fin_p = hp

    # jk='cat' projection stored as per-layer [Hp, Hp] slices of W_jk^T (no concat needed)
    jk_slices = [params["jk_w"][:, l * hidden_dim:(l + 1) * hidden_dim].T
                 for l in range(num_layers)]
    prepped["jk_wt"] = jnp.stack(
        [_pad2(s, hp, hp) for s in jk_slices]).astype(jnp.bfloat16)   # [L, Hp, Hp]
    prepped["jk_b"] = _pad2(params["jk_b"].reshape(1, -1), 1, hp)

    # fold eval-mode BatchNorm: W1' = W1 * s, b1' = (b1 - mean) * s + beta
    s = params["bn_gamma"] / jnp.sqrt(params["bn_var"] + eps)
    w1f = params["mlp_w1"] * s[:, None]
    b1f = (params["mlp_b1"] - params["bn_mean"]) * s + params["bn_beta"]
    prepped["w1t"] = _pad2(w1f.T, hp, hp).astype(jnp.bfloat16)
    prepped["b1"] = _pad2(b1f.reshape(1, -1), 1, hp)
    prepped["w2t"] = _pad2(params["mlp_w2"].T, hp, op).astype(jnp.bfloat16)
    prepped["b2"] = _pad2(params["mlp_b2"].reshape(1, -1), 1, op)
    return prepped


# ---------------- graph construction helpers (plain JAX glue) ----------------

def build_normalized_adjacency(edge_src, edge_dst, num_nodes):
    # A_hat = D^{-1/2} (A + I) D^{-1/2}, matching GCNConv's gcn_norm with add_self_loops=True
    a = jnp.zeros((num_nodes, num_nodes), jnp.float32)
    a = a.at[edge_dst, edge_src].add(1.0)
    a = a + jnp.eye(num_nodes, dtype=jnp.float32)
    deg = a.sum(axis=1)
    dinv = 1.0 / jnp.sqrt(deg)
    return dinv[:, None] * a * dinv[None, :]


def prepare_graph_inputs(x, edge_src, edge_dst, num_graphs, nodes_per_graph):
    # A PyG batch adjacency is block-diagonal (no cross-graph edges); graphs here are
    # equal-sized & contiguous, so slice the normalized adjacency into per-graph blocks.
    # Normalization is done in f32; only the final matmul operands are cast to bf16.
    num_nodes = num_graphs * nodes_per_graph
    a_hat = build_normalized_adjacency(edge_src, edge_dst, num_nodes)
    a4 = a_hat.reshape(num_graphs, nodes_per_graph, num_graphs, nodes_per_graph)
    idx = jnp.arange(num_graphs)
    a_blocks = a4[idx, :, idx, :].astype(jnp.bfloat16)        # [G, n, n]

    input_dim = x.shape[-1]
    fp = _round_up(input_dim, LANE)
    x_blocks = x.reshape(num_graphs, nodes_per_graph, input_dim)
    x_blocks = jnp.pad(
        x_blocks, ((0, 0), (0, 0), (0, fp - input_dim))).astype(jnp.bfloat16)  # [G, n, Fp]
    return a_blocks, x_blocks


if __name__ == "__main__":
    input_dim, hidden_dim, out_dim, num_layers = 8, 32, 4, 3
    num_graphs, nodes_per_graph = 2, 8
    num_nodes = num_graphs * nodes_per_graph

    key = jax.random.PRNGKey(0)
    k_x, k_p = jax.random.split(key)

    # node features x: [N, input_dim]
    x = jax.random.normal(k_x, (num_nodes, input_dim), jnp.float32)

    # edge_index: symmetric ring within each graph (deterministic), PyG-style batch
    srcs, dsts = [], []
    for g in range(num_graphs):
        base = g * nodes_per_graph
        for i in range(nodes_per_graph):
            j = (i + 1) % nodes_per_graph
            srcs += [base + i, base + j]
            dsts += [base + j, base + i]
    edge_src = jnp.array(srcs, jnp.int32)
    edge_dst = jnp.array(dsts, jnp.int32)

    a_blocks, x_blocks = prepare_graph_inputs(
        x, edge_src, edge_dst, num_graphs, nodes_per_graph)

    params = init_params(k_p, input_dim, hidden_dim, out_dim, num_layers)
    prepped = prepare_padded_params(params, input_dim, hidden_dim, out_dim, num_layers)

    out = gcn_forward(prepped, a_blocks, x_blocks, out_dim)
    out = jax.block_until_ready(out)
    assert out.shape == (num_graphs, out_dim), out.shape
    assert out.dtype == jnp.float32
    assert bool(jnp.all(jnp.isfinite(out)))
    print("KERNEL_OK")
</pallas_src>

<mosaic_0001>
module attributes {stable_mosaic.version = 11 : i64} {
  func.func @kernel(%arg0: i32, %arg1: memref<1x8x8xbf16, #tpu.memory_space<vmem>>, %arg2: memref<1x8x128xbf16, #tpu.memory_space<vmem>>, %arg3: memref<128x128xbf16, #tpu.memory_space<vmem>>, %arg4: memref<128x128xbf16, #tpu.memory_space<vmem>>, %arg5: memref<128x128xbf16, #tpu.memory_space<vmem>>, %arg6: memref<1x128xf32, #tpu.memory_space<vmem>>, %arg7: memref<1x128xf32, #tpu.memory_space<vmem>>, %arg8: memref<1x128xf32, #tpu.memory_space<vmem>>, %arg9: memref<3x128x128xbf16, #tpu.memory_space<vmem>>, %arg10: memref<1x128xf32, #tpu.memory_space<vmem>>, %arg11: memref<128x128xbf16, #tpu.memory_space<vmem>>, %arg12: memref<1x128xf32, #tpu.memory_space<vmem>>, %arg13: memref<128x128xbf16, #tpu.memory_space<vmem>>, %arg14: memref<1x128xf32, #tpu.memory_space<vmem>>, %arg15: memref<1x1x128xf32, #tpu.memory_space<vmem>>) attributes {dimension_semantics = [#tpu.dimension_semantics<parallel>], iteration_bounds = array<i64: 2>, scalar_prefetch = 0 : i64, scratch_operands = 0 : i64, tpu.core_type = #tpu.core_type<tc>, window_params = [{transform_indices = @transform_0, window_bounds = array<i64: 1, 8, 8>}, {transform_indices = @transform_1, window_bounds = array<i64: 1, 8, 128>}, {pipeline_mode = #tpu.pipeline_mode<synchronous>, transform_indices = @transform_2, window_bounds = array<i64: 128, 128>}, {pipeline_mode = #tpu.pipeline_mode<synchronous>, transform_indices = @transform_3, window_bounds = array<i64: 128, 128>}, {pipeline_mode = #tpu.pipeline_mode<synchronous>, transform_indices = @transform_4, window_bounds = array<i64: 128, 128>}, {pipeline_mode = #tpu.pipeline_mode<synchronous>, transform_indices = @transform_5, window_bounds = array<i64: 1, 128>}, {pipeline_mode = #tpu.pipeline_mode<synchronous>, transform_indices = @transform_6, window_bounds = array<i64: 1, 128>}, {pipeline_mode = #tpu.pipeline_mode<synchronous>, transform_indices = @transform_7, window_bounds = array<i64: 1, 128>}, {pipeline_mode = #tpu.pipeline_mode<synchronous>, transform_indices = @transform_8, window_bounds = array<i64: 3, 128, 128>}, {pipeline_mode = #tpu.pipeline_mode<synchronous>, transform_indices = @transform_9, window_bounds = array<i64: 1, 128>}, {pipeline_mode = #tpu.pipeline_mode<synchronous>, transform_indices = @transform_10, window_bounds = array<i64: 128, 128>}, {pipeline_mode = #tpu.pipeline_mode<synchronous>, transform_indices = @transform_11, window_bounds = array<i64: 1, 128>}, {pipeline_mode = #tpu.pipeline_mode<synchronous>, transform_indices = @transform_12, window_bounds = array<i64: 128, 128>}, {pipeline_mode = #tpu.pipeline_mode<synchronous>, transform_indices = @transform_13, window_bounds = array<i64: 1, 128>}, {transform_indices = @transform_14, window_bounds = array<i64: 1, 1, 128>}]} {
    %c0 = arith.constant 0 : index
    %c0_0 = arith.constant 0 : index
    %c0_1 = arith.constant 0 : index
    %0 = vector.load %arg1[%c0, %c0_0, %c0_1] : memref<1x8x8xbf16, #tpu.memory_space<vmem>>, vector<1x8x8xbf16>
    %1 = vector.shape_cast %0 : vector<1x8x8xbf16> to vector<8x8xbf16>
    %c0_2 = arith.constant 0 : index
    %c0_3 = arith.constant 0 : index
    %c0_4 = arith.constant 0 : index
    %2 = vector.load %arg2[%c0_2, %c0_3, %c0_4] : memref<1x8x128xbf16, #tpu.memory_space<vmem>>, vector<1x8x128xbf16>
    %3 = vector.shape_cast %2 : vector<1x8x128xbf16> to vector<8x128xbf16>
    %cst = arith.constant 0.000000e+00 : f32
    %4 = vector.broadcast %cst : f32 to vector<8x128xf32>
    %c0_5 = arith.constant 0 : index
    %c0_6 = arith.constant 0 : index
    %5 = vector.load %arg3[%c0_5, %c0_6] : memref<128x128xbf16, #tpu.memory_space<vmem>>, vector<128x128xbf16>
    %cst_7 = arith.constant dense<0.000000e+00> : vector<8x128xf32>
    %6 = tpu.matmul %3, %5, %cst_7 {dimension_numbers = #tpu.dot_dimension_numbers<[1], [0], [0], [1], [0, 0, 1, 1], [], []>} : vector<8x128xbf16>, vector<128x128xbf16>, vector<8x128xf32> -> vector<8x128xf32>
    %7 = arith.truncf %6 : vector<8x128xf32> to vector<8x128xbf16>
    %cst_8 = arith.constant dense<0.000000e+00> : vector<8x128xf32>
    %8 = tpu.matmul %1, %7, %cst_8 {dimension_numbers = #tpu.dot_dimension_numbers<[1], [0], [0], [1], [0, 0, 1, 1], [], []>} : vector<8x8xbf16>, vector<8x128xbf16>, vector<8x128xf32> -> vector<8x128xf32>
    %c0_9 = arith.constant 0 : index
    %c0_10 = arith.constant 0 : index
    %9 = vector.load %arg6[%c0_9, %c0_10] : memref<1x128xf32, #tpu.memory_space<vmem>>, vector<1x128xf32>
    %10 = vector.broadcast %9 : vector<1x128xf32> to vector<8x128xf32>
    %11 = arith.addf %8, %10 : vector<8x128xf32>
    %cst_11 = arith.constant 0.000000e+00 : f32
    %12 = vector.broadcast %cst_11 : f32 to vector<8x128xf32>
    %13 = arith.maximumf %11, %12 : vector<8x128xf32>
    %14 = arith.truncf %13 : vector<8x128xf32> to vector<8x128xbf16>
    %c0_12 = arith.constant 0 : index
    %c0_13 = arith.constant 0 : index
    %c0_14 = arith.constant 0 : index
    %15 = vector.load %arg9[%c0_12, %c0_13, %c0_14] : memref<3x128x128xbf16, #tpu.memory_space<vmem>>, vector<1x128x128xbf16>
    %16 = vector.shape_cast %15 : vector<1x128x128xbf16> to vector<128x128xbf16>
    %cst_15 = arith.constant dense<0.000000e+00> : vector<8x128xf32>
    %17 = tpu.matmul %14, %16, %cst_15 {dimension_numbers = #tpu.dot_dimension_numbers<[1], [0], [0], [1], [0, 0, 1, 1], [], []>} : vector<8x128xbf16>, vector<128x128xbf16>, vector<8x128xf32> -> vector<8x128xf32>
    %18 = arith.addf %4, %17 : vector<8x128xf32>
    %c0_16 = arith.constant 0 : index
    %c0_17 = arith.constant 0 : index
    %19 = vector.load %arg4[%c0_16, %c0_17] : memref<128x128xbf16, #tpu.memory_space<vmem>>, vector<128x128xbf16>
    %cst_18 = arith.constant dense<0.000000e+00> : vector<8x128xf32>
    %20 = tpu.matmul %14, %19, %cst_18 {dimension_numbers = #tpu.dot_dimension_numbers<[1], [0], [0], [1], [0, 0, 1, 1], [], []>} : vector<8x128xbf16>, vector<128x128xbf16>, vector<8x128xf32> -> vector<8x128xf32>
    %21 = arith.truncf %20 : vector<8x128xf32> to vector<8x128xbf16>
    %cst_19 = arith.constant dense<0.000000e+00> : vector<8x128xf32>
    %22 = tpu.matmul %1, %21, %cst_19 {dimension_numbers = #tpu.dot_dimension_numbers<[1], [0], [0], [1], [0, 0, 1, 1], [], []>} : vector<8x8xbf16>, vector<8x128xbf16>, vector<8x128xf32> -> vector<8x128xf32>
    %c0_20 = arith.constant 0 : index
    %c0_21 = arith.constant 0 : index
    %23 = vector.load %arg7[%c0_20, %c0_21] : memref<1x128xf32, #tpu.memory_space<vmem>>, vector<1x128xf32>
    %24 = vector.broadcast %23 : vector<1x128xf32> to vector<8x128xf32>
    %25 = arith.addf %22, %24 : vector<8x128xf32>
    %cst_22 = arith.constant 0.000000e+00 : f32
    %26 = vector.broadcast %cst_22 : f32 to vector<8x128xf32>
    %27 = arith.maximumf %25, %26 : vector<8x128xf32>
    %28 = arith.truncf %27 : vector<8x128xf32> to vector<8x128xbf16>
    %c1 = arith.constant 1 : index
    %c0_23 = arith.constant 0 : index
    %c0_24 = arith.constant 0 : index
    %29 = vector.load %arg9[%c1, %c0_23, %c0_24] : memref<3x128x128xbf16, #tpu.memory_space<vmem>>, vector<1x128x128xbf16>
    %30 = vector.shape_cast %29 : vector<1x128x128xbf16> to vector<128x128xbf16>
    %cst_25 = arith.constant dense<0.000000e+00> : vector<8x128xf32>
    %31 = tpu.matmul %28, %30, %cst_25 {dimension_numbers = #tpu.dot_dimension_numbers<[1], [0], [0], [1], [0, 0, 1, 1], [], []>} : vector<8x128xbf16>, vector<128x128xbf16>, vector<8x128xf32> -> vector<8x128xf32>
    %32 = arith.addf %18, %31 : vector<8x128xf32>
    %c0_26 = arith.constant 0 : index
    %c0_27 = arith.constant 0 : index
    %33 = vector.load %arg5[%c0_26, %c0_27] : memref<128x128xbf16, #tpu.memory_space<vmem>>, vector<128x128xbf16>
    %cst_28 = arith.constant dense<0.000000e+00> : vector<8x128xf32>
    %34 = tpu.matmul %28, %33, %cst_28 {dimension_numbers = #tpu.dot_dimension_numbers<[1], [0], [0], [1], [0, 0, 1, 1], [], []>} : vector<8x128xbf16>, vector<128x128xbf16>, vector<8x128xf32> -> vector<8x128xf32>
    %35 = arith.truncf %34 : vector<8x128xf32> to vector<8x128xbf16>
    %cst_29 = arith.constant dense<0.000000e+00> : vector<8x128xf32>
    %36 = tpu.matmul %1, %35, %cst_29 {dimension_numbers = #tpu.dot_dimension_numbers<[1], [0], [0], [1], [0, 0, 1, 1], [], []>} : vector<8x8xbf16>, vector<8x128xbf16>, vector<8x128xf32> -> vector<8x128xf32>
    %c0_30 = arith.constant 0 : index
    %c0_31 = arith.constant 0 : index
    %37 = vector.load %arg8[%c0_30, %c0_31] : memref<1x128xf32, #tpu.memory_space<vmem>>, vector<1x128xf32>
    %38 = vector.broadcast %37 : vector<1x128xf32> to vector<8x128xf32>
    %39 = arith.addf %36, %38 : vector<8x128xf32>
    %cst_32 = arith.constant 0.000000e+00 : f32
    %40 = vector.broadcast %cst_32 : f32 to vector<8x128xf32>
    %41 = arith.maximumf %39, %40 : vector<8x128xf32>
    %42 = arith.truncf %41 : vector<8x128xf32> to vector<8x128xbf16>
    %c2 = arith.constant 2 : index
    %c0_33 = arith.constant 0 : index
    %c0_34 = arith.constant 0 : index
    %43 = vector.load %arg9[%c2, %c0_33, %c0_34] : memref<3x128x128xbf16, #tpu.memory_space<vmem>>, vector<1x128x128xbf16>
    %44 = vector.shape_cast %43 : vector<1x128x128xbf16> to vector<128x128xbf16>
    %cst_35 = arith.constant dense<0.000000e+00> : vector<8x128xf32>
    %45 = tpu.matmul %42, %44, %cst_35 {dimension_numbers = #tpu.dot_dimension_numbers<[1], [0], [0], [1], [0, 0, 1, 1], [], []>} : vector<8x128xbf16>, vector<128x128xbf16>, vector<8x128xf32> -> vector<8x128xf32>
    %46 = arith.addf %32, %45 : vector<8x128xf32>
    %c0_36 = arith.constant 0 : index
    %c0_37 = arith.constant 0 : index
    %47 = vector.load %arg10[%c0_36, %c0_37] : memref<1x128xf32, #tpu.memory_space<vmem>>, vector<1x128xf32>
    %48 = vector.broadcast %47 : vector<1x128xf32> to vector<8x128xf32>
    %49 = arith.addf %46, %48 : vector<8x128xf32>
    %cst_38 = arith.constant dense<0.000000e+00> : vector<128xf32>
    %50 = vector.multi_reduction <add>, %49, %cst_38 [0] : vector<8x128xf32> to vector<128xf32>
    %51 = vector.shape_cast %50 : vector<128xf32> to vector<1x128xf32>
    %52 = arith.truncf %51 : vector<1x128xf32> to vector<1x128xbf16>
    %c0_39 = arith.constant 0 : index
    %c0_40 = arith.constant 0 : index
    %53 = vector.load %arg11[%c0_39, %c0_40] : memref<128x128xbf16, #tpu.memory_space<vmem>>, vector<128x128xbf16>
    %cst_41 = arith.constant dense<0.000000e+00> : vector<1x128xf32>
    %54 = tpu.matmul %52, %53, %cst_41 {dimension_numbers = #tpu.dot_dimension_numbers<[1], [0], [0], [1], [0, 0, 1, 1], [], []>} : vector<1x128xbf16>, vector<128x128xbf16>, vector<1x128xf32> -> vector<1x128xf32>
    %c0_42 = arith.constant 0 : index
    %c0_43 = arith.constant 0 : index
    %55 = vector.load %arg12[%c0_42, %c0_43] : memref<1x128xf32, #tpu.memory_space<vmem>>, vector<1x128xf32>
    %56 = arith.addf %54, %55 : vector<1x128xf32>
    %cst_44 = arith.constant 0.000000e+00 : f32
    %57 = vector.broadcast %cst_44 : f32 to vector<1x128xf32>
    %58 = arith.maximumf %56, %57 : vector<1x128xf32>
    %59 = arith.truncf %58 : vector<1x128xf32> to vector<1x128xbf16>
    %c0_45 = arith.constant 0 : index
    %c0_46 = arith.constant 0 : index
    %60 = vector.load %arg13[%c0_45, %c0_46] : memref<128x128xbf16, #tpu.memory_space<vmem>>, vector<128x128xbf16>
    %cst_47 = arith.constant dense<0.000000e+00> : vector<1x128xf32>
    %61 = tpu.matmul %59, %60, %cst_47 {dimension_numbers = #tpu.dot_dimension_numbers<[1], [0], [0], [1], [0, 0, 1, 1], [], []>} : vector<1x128xbf16>, vector<128x128xbf16>, vector<1x128xf32> -> vector<1x128xf32>
    %c0_48 = arith.constant 0 : index
    %c0_49 = arith.constant 0 : index
    %62 = vector.load %arg14[%c0_48, %c0_49] : memref<1x128xf32, #tpu.memory_space<vmem>>, vector<1x128xf32>
    %63 = arith.addf %61, %62 : vector<1x128xf32>
    %c0_50 = arith.constant 0 : index
    %c0_51 = arith.constant 0 : index
    %c0_52 = arith.constant 0 : index
    %64 = vector.load %arg15[%c0_50, %c0_51, %c0_52] : memref<1x1x128xf32, #tpu.memory_space<vmem>>, vector<1x1x128xf32>
    %65 = vector.shape_cast %64 : vector<1x1x128xf32> to vector<1x128xf32>
    %66 = vector.shape_cast %63 : vector<1x128xf32> to vector<1x1x128xf32>
    tpu.vector_store %arg15[%c0_50, %c0_51, %c0_52], %66 {strides = array<i32>} : memref<1x1x128xf32, #tpu.memory_space<vmem>>, vector<1x1x128xf32>,
    return
  }
  func.func @transform_0(%arg0: i32) -> (i32, i32, i32) {
    %c0_i32 = arith.constant 0 : i32
    %c0_i32_0 = arith.constant 0 : i32
    %c0_i32_1 = arith.constant 0 : i32
    return %arg0, %c0_i32, %c0_i32_0 : i32, i32, i32
  }
  func.func @transform_1(%arg0: i32) -> (i32, i32, i32) {
    %c0_i32 = arith.constant 0 : i32
    %c0_i32_0 = arith.constant 0 : i32
    %c0_i32_1 = arith.constant 0 : i32
    return %arg0, %c0_i32, %c0_i32_0 : i32, i32, i32
  }
  func.func @transform_2(%arg0: i32) -> (i32, i32) {
    %c0_i32 = arith.constant 0 : i32
    %c0_i32_0 = arith.constant 0 : i32
    %c0_i32_1 = arith.constant 0 : i32
    return %c0_i32, %c0_i32_0 : i32, i32
  }
  func.func @transform_3(%arg0: i32) -> (i32, i32) {
    %c0_i32 = arith.constant 0 : i32
    %c0_i32_0 = arith.constant 0 : i32
    %c0_i32_1 = arith.constant 0 : i32
    return %c0_i32, %c0_i32_0 : i32, i32
  }
  func.func @transform_4(%arg0: i32) -> (i32, i32) {
    %c0_i32 = arith.constant 0 : i32
    %c0_i32_0 = arith.constant 0 : i32
    %c0_i32_1 = arith.constant 0 : i32
    return %c0_i32, %c0_i32_0 : i32, i32
  }
  func.func @transform_5(%arg0: i32) -> (i32, i32) {
    %c0_i32 = arith.constant 0 : i32
    %c0_i32_0 = arith.constant 0 : i32
    %c0_i32_1 = arith.constant 0 : i32
    return %c0_i32, %c0_i32_0 : i32, i32
  }
  func.func @transform_6(%arg0: i32) -> (i32, i32) {
    %c0_i32 = arith.constant 0 : i32
    %c0_i32_0 = arith.constant 0 : i32
    %c0_i32_1 = arith.constant 0 : i32
    return %c0_i32, %c0_i32_0 : i32, i32
  }
  func.func @transform_7(%arg0: i32) -> (i32, i32) {
    %c0_i32 = arith.constant 0 : i32
    %c0_i32_0 = arith.constant 0 : i32
    %c0_i32_1 = arith.constant 0 : i32
    return %c0_i32, %c0_i32_0 : i32, i32
  }
  func.func @transform_8(%arg0: i32) -> (i32, i32, i32) {
    %c0_i32 = arith.constant 0 : i32
    %c0_i32_0 = arith.constant 0 : i32
    %c0_i32_1 = arith.constant 0 : i32
    %c0_i32_2 = arith.constant 0 : i32
    return %c0_i32, %c0_i32_0, %c0_i32_1 : i32, i32, i32
  }
  func.func @transform_9(%arg0: i32) -> (i32, i32) {
    %c0_i32 = arith.constant 0 : i32
    %c0_i32_0 = arith.constant 0 : i32
    %c0_i32_1 = arith.constant 0 : i32
    return %c0_i32, %c0_i32_0 : i32, i32
  }
  func.func @transform_10(%arg0: i32) -> (i32, i32) {
    %c0_i32 = arith.constant 0 : i32
    %c0_i32_0 = arith.constant 0 : i32
    %c0_i32_1 = arith.constant 0 : i32
    return %c0_i32, %c0_i32_0 : i32, i32
  }
  func.func @transform_11(%arg0: i32) -> (i32, i32) {
    %c0_i32 = arith.constant 0 : i32
    %c0_i32_0 = arith.constant 0 : i32
    %c0_i32_1 = arith.constant 0 : i32
    return %c0_i32, %c0_i32_0 : i32, i32
  }
  func.func @transform_12(%arg0: i32) -> (i32, i32) {
    %c0_i32 = arith.constant 0 : i32
    %c0_i32_0 = arith.constant 0 : i32
    %c0_i32_1 = arith.constant 0 : i32
    return %c0_i32, %c0_i32_0 : i32, i32
  }
  func.func @transform_13(%arg0: i32) -> (i32, i32) {
    %c0_i32 = arith.constant 0 : i32
    %c0_i32_0 = arith.constant 0 : i32
    %c0_i32_1 = arith.constant 0 : i32
    return %c0_i32, %c0_i32_0 : i32, i32
  }
  func.func @transform_14(%arg0: i32) -> (i32, i32, i32) {
    %c0_i32 = arith.constant 0 : i32
    %c0_i32_0 = arith.constant 0 : i32
    %c0_i32_1 = arith.constant 0 : i32
    return %arg0, %c0_i32, %c0_i32_0 : i32, i32, i32
  }
}

</mosaic_0001>

<bundles_post_ra>
// kernel: tpu_custom_call.1
= control target key start
LH: loop header
LB: loop body
LE: loop exit
PB: predicated region body
PF: predicated region fallthrough
CT: control target
= control target key end

     0   :  { %s3138_s0 = inlined_call_operand.hbm [shape: bf16[2,8,8], index: 0, kind: input, shape index: {}]   ;;  %s3139_s1 = inlined_call_operand.hbm [shape: bf16[2,8,128], index: 1, kind: input, shape index: {}]   ;;  %s3140_s2 = inlined_call_operand.hbm [shape: bf16[128,128], index: 2, kind: input, shape index: {}]   ;;  %s3141_s3 = inlined_call_operand.hbm [shape: bf16[128,128], index: 3, kind: input, shape index: {}]   ;;  %s3142_s4 = inlined_call_operand.hbm [shape: bf16[128,128], index: 4, kind: input, shape index: {}]   ;;  %s3143_s5 = inlined_call_operand.vmem [shape: f32[1,128], index: 5, kind: input, shape index: {}]   ;;  %s3144_s6 = inlined_call_operand.vmem [shape: f32[1,128], index: 6, kind: input, shape index: {}]   ;;  %s3145_s7 = inlined_call_operand.vmem [shape: f32[1,128], index: 7, kind: input, shape index: {}]   ;;  %s3146_s8 = inlined_call_operand.hbm [shape: bf16[3,128,128], index: 8, kind: input, shape index: {}]   ;;  %s3147_s9 = inlined_call_operand.vmem [shape: f32[1,128], index: 9, kind: input, shape index: {}]   ;;  %s3148_s10 = inlined_call_operand.hbm [shape: bf16[128,128], index: 10, kind: input, shape index: {}]   ;;  %s3149_s11 = inlined_call_operand.vmem [shape: f32[1,128], index: 11, kind: input, shape index: {}]   ;;  %s3150_s12 = inlined_call_operand.hbm [shape: bf16[128,128], index: 12, kind: input, shape index: {}]   ;;  %s3151_s13 = inlined_call_operand.vmem [shape: f32[1,128], index: 13, kind: input, shape index: {}]   ;;  %s3152_s14 = inlined_call_operand.hbm [shape: f32[2,1,128], index: 14, kind: output, shape index: {}]  }
   0x1   :  { %3162 = sst [smem:[#allocation28_spill]] %s3140_s2 }
   0x2   :  { %3163 = sst [smem:[#allocation29_spill]] %s3141_s3 }
   0x3   :  { %3164 = sst [smem:[#allocation30_spill]] %s3142_s4 }
   0x4   :  { %3165 = sst [smem:[#allocation31_spill]] %s3146_s8 }
   0x5   :  { %3166 = sst [smem:[#allocation32_spill]] %s3148_s10 }
   0x6   :  { %3167 = sst [smem:[#allocation33_spill]] %s3150_s12 }
   0x7   :  { %3168 = sst [smem:[#allocation34_spill]] %s3152_s14 }
   0x8   :  { %19 = vsyncpa [#allocation3], 0 }
   0x9   :  { %21 = vsyncpa [#allocation3 + $0x1], 0 }
   0xa   :  { %22 = vsyncpa [#allocation6], 0 }
   0xb   :  { %24 = vsyncpa [#allocation6 + $0x1], 0 }
   0xc   :  { %25 = vsyncpa [#allocation9], 0 }
   0xd   :  { %26 = vsyncpa [#allocation12], 0 }
   0xe   :  { %27 = vsyncpa [#allocation15], 0 }
   0xf   :  { %28 = vsyncpa [#allocation4], 0 }
  0x10   :  { %30 = vsyncpa [#allocation4 + $0x1], 0  ;;  %s2705_s29 = smov 0   ;;  %s2707_s30 = smov 0  }
  0x11   :  { %s2709_s15 = smov 0   ;;  %s2711_s16 = smov 0  }
  0x12 LB: > { %3169 = sst [smem:[#allocation24_spill]] %s2611_s15  ;;  %s2617_s17 = smov [#allocation7]   ;;  %s2615_s16 = sphi %s2711_s16, %s3202_s16   ;;  %s2611_s15 = sphi %s2709_s15, %s3204_s15   ;;  %s2607_s30 = sphi %s2707_s30, %s3206_s30   ;;  %s2603_s29 = sphi %s2705_s29, %s3205_s29  }
  0x13   : > { %s383_s18 = sshll.u32 %s2617_s17, 4  ;;  %s2726_s19 = sadd.s32 4294967295, %s2615_s16   ;;  %s384_s18 = int_to_ptr.vmem [resolvable:$true] %s383_s18 }
  0x14   : > { %p1788_p0 = scmp.ge.s32.totalorder %s2615_s16, 1  ;;  %p3158_p1 = scmp.eq.s32.totalorder %s2726_s19, 0 }
  0x15   : > { %p371_p2 = scmp.lt.s32.totalorder %s2615_s16, 3  ;;  %s2618_s21 = smov [#allocation8]  }
  0x16   : > { %s396_s22 = sshll.u32 %s2618_s21, 4  ;;  %s2619_s24 = smov [#allocation11]   ;;  %s2744_s22 = int_to_ptr.vmem [resolvable:$true] %s396_s22 }
  0x17   : > { %p2731_p3 = pnand %p1788_p0, %p371_p2  ;;  %s431_s25 = sshll.u32 %s2619_s24, 4  ;;  %s2746_s25 = int_to_ptr.vmem [resolvable:$true] %s431_s25 }
  0x18   : > { %s2330_s27 = scalar_lea.vmem %s384_s18, 1024  ;;  %p2338_p11 = scmp.lt.s32.totalorder %s384_s18, %s384_s18 }
  0x19   : > { %s3170_s20 = scalar_select %p2731_p3, 1, 0 }
  0x1a   : > { %p2169_p5 = pneg %p2731_p3  ;;  %p2331_p8 = scmp.ne.s32.totalorder %s384_s18, %s2330_s27 }
  0x1b   : > { %p2339_p12 = scmp.lt.s32.totalorder %s2330_s27, %s2330_s27 }
  0x1c   : > { %p2740_p6 = pnand %p2169_p5, %p3158_p1 }
  0x1d   : > { %p2340_p13 = por %p2339_p12, %p2338_p11 }
  0x1e   : > { %p2750_p7 = pneg %p2740_p6 }
  0x20   : > { %p2333_p9 = pnand %p2331_p8, %p2750_p7 }
  0x22   : > { %p2334_p10 = pneg %p2333_p9 }
  0x24   : > { %p2341_p0 = pnand %p2340_p13, %p2334_p10 }
  0x26   : > { %2344 = shalt.err (!%p2341_p0)
}
  0x27   : > { %s2620_s28 = smov 64   ;;  %s2621_s17 = smov 4  }
  0x28   : > { %s3173_s2 = sld [smem:[#allocation28_spill]]  ;;  %s2356_s14 = scalar_lea.vmem %s2744_s22, 1024 }
  0x29   : > { %p2357_p2 = scmp.ne.s32.totalorder %s2744_s22, %s2356_s14  ;;  %p2364_p9 = scmp.lt.s32.totalorder %s2744_s22, %s2744_s22 }
  0x2a   : > { %p2365_p10 = scmp.lt.s32.totalorder %s2356_s14, %s2356_s14 }
  0x2b   : > { %p2359_p5 = pnand %p2357_p2, %p2750_p7 }
  0x2c   : > { %p2366_p11 = por %p2365_p10, %p2364_p9 }
  0x2d   : > { %p2360_p8 = pneg %p2359_p5 }
  0x2e   : > { %2172 = dma.hbm_to_vmem [thread:$0]  (!%p2740_p6), %s3173_s2, 1024, %s384_s18, [#allocation6], %s2620_s28, %s2620_s28, %s2621_s17  }
  0x2f   : > { %p2367_p12 = pnand %p2366_p11, %p2360_p8 }
  0x31   : > { %2370 = shalt.err (!%p2367_p12)
}
  0x32   : > { %s3174_s3 = sld [smem:[#allocation29_spill]]  ;;  %s2382_s18 = scalar_lea.vmem %s2746_s25, 3072 }
  0x33   : > { %p2383_p13 = scmp.ne.s32.totalorder %s2746_s25, %s2382_s18  ;;  %p2390_p5 = scmp.lt.s32.totalorder %s2746_s25, %s2746_s25 }
  0x34   : > { %p2391_p8 = scmp.lt.s32.totalorder %s2382_s18, %s2382_s18 }
  0x35   : > { %p2385_p0 = pnand %p2383_p13, %p2750_p7 }
  0x36   : > { %p2392_p9 = por %p2391_p8, %p2390_p5 }
  0x37   : > { %p2386_p2 = pneg %p2385_p0 }
  0x38   : > { %2175 = dma.hbm_to_vmem [thread:$0]  (!%p2740_p6), %s3174_s3, 1024, %s2744_s22, [#allocation9], %s2620_s28, %s2620_s28, %s2621_s17  }
  0x39   : > { %p2393_p10 = pnand %p2392_p9, %p2386_p2 }
  0x3b   : > { %2396 = shalt.err (!%p2393_p10)
}
  0x3c   : > { %s3175_s8 = sld [smem:[#allocation31_spill]]  ;;  %s2622_s22 = smov [#allocation10]  }
  0x3d   : > { %s409_s27 = sshll.u32 %s2622_s22, 4  ;;  %s2623_s21 = smov [#allocation13]   ;;  %s410_s27 = int_to_ptr.vmem [resolvable:$true] %s409_s27 }
  0x3e   : > { %s447_s2 = sshll.u32 %s2623_s21, 4  ;;  %s2408_s18 = scalar_lea.vmem %s410_s27, 1024  ;;  %s448_s2 = int_to_ptr.vmem [resolvable:$true] %s447_s2 }
  0x3f   : > { %p2409_p11 = scmp.ne.s32.totalorder %s410_s27, %s2408_s18  ;;  %p2416_p0 = scmp.lt.s32.totalorder %s410_s27, %s410_s27 }
  0x40   : > { %p2417_p2 = scmp.lt.s32.totalorder %s2408_s18, %s2408_s18 }
  0x41   : > { %p2411_p12 = pnand %p2409_p11, %p2750_p7 }
  0x42   : > { %2181 = dma.hbm_to_vmem [thread:$0]  (!%p2740_p6), %s3175_s8, 3072, %s2746_s25, [#allocation12], %s2620_s28, %s2620_s28, %s2621_s17  }
  0x43   : > { %p2412_p13 = pneg %p2411_p12  ;;  %p2418_p5 = por %p2417_p2, %p2416_p0 }
  0x45   : > { %p2419_p8 = pnand %p2418_p5, %p2412_p13 }
  0x47   : > { %2422 = shalt.err (!%p2419_p8)
}
  0x48   : > { %s3176_s4 = sld [smem:[#allocation30_spill]]  ;;  %s2434_s24 = scalar_lea.vmem %s448_s2, 1024 }
  0x49   : > { %p2435_p9 = scmp.ne.s32.totalorder %s448_s2, %s2434_s24  ;;  %p2442_p12 = scmp.lt.s32.totalorder %s448_s2, %s448_s2 }
  0x4a   : > { %p2443_p0 = scmp.lt.s32.totalorder %s2434_s24, %s2434_s24 }
  0x4b   : > { %p2437_p10 = pnand %p2435_p9, %p2750_p7 }
  0x4c   : > { %p2444_p13 = por %p2443_p0, %p2442_p12 }
  0x4d   : > { %p2438_p11 = pneg %p2437_p10 }
  0x4e   : > { %2178 = dma.hbm_to_vmem [thread:$0]  (!%p2740_p6), %s3176_s4, 1024, %s410_s27, [#allocation9], %s2620_s28, %s2620_s28, %s2621_s17  }
  0x4f   : > { %p2445_p2 = pnand %p2444_p13, %p2438_p11 }
  0x51   : > { %2448 = shalt.err (!%p2445_p2)
}
  0x52   : > { %s3177_s10 = sld [smem:[#allocation32_spill]]  ;;  %s2624_s27 = smov [#allocation14]  }
  0x53   : > { %s463_s18 = sshll.u32 %s2624_s27, 4  ;;  %s464_s18 = int_to_ptr.vmem [resolvable:$true] %s463_s18 }
  0x54   : > { %s2460_s25 = scalar_lea.vmem %s464_s18, 1024  ;;  %p2468_p10 = scmp.lt.s32.totalorder %s464_s18, %s464_s18 }
  0x55   : > { %p2461_p5 = scmp.ne.s32.totalorder %s464_s18, %s2460_s25  ;;  %p2469_p11 = scmp.lt.s32.totalorder %s2460_s25, %s2460_s25 }
  0x57   : > { %p2463_p8 = pnand %p2461_p5, %p2750_p7  ;;  %p2470_p12 = por %p2469_p11, %p2468_p10 }
  0x58   : > { %2184 = dma.hbm_to_vmem [thread:$0]  (!%p2740_p6), %s3177_s10, 1024, %s448_s2, [#allocation12], %s2620_s28, %s2620_s28, %s2621_s17  }
  0x59   : > { %p2464_p9 = pneg %p2463_p8 }
  0x5b   : > { %p2471_p0 = pnand %p2470_p12, %p2464_p9 }
  0x5d   : > { %2474 = shalt.err (!%p2471_p0)
}
  0x5e   : > { %s3178_s12 = sld [smem:[#allocation33_spill]]  ;;  %s1787_s23 = sadd.s32 4294967294, %s2615_s16  }
  0x5f   : > { %s2826_s26 = sadd.s32 1, %s2615_s16   ;;  %s43_s22 = sadd.s32 1, %s2611_s15 }
  0x60   : > { %3179 = sst [smem:[#allocation25_spill]] %s2826_s26  ;;  %s40_s24 = ssub.s32 %s2615_s16, %s2826_s26 }
  0x61   : > { %p41_p7 = scmp.eq.s32.totalorder %s40_s24, 0  ;;  %p50_p13 = scmp.ne.s32.totalorder %s2611_s15, %s2607_s30 }
  0x62   : > { %p51_p2 = scmp.eq.s32.totalorder %s2615_s16, 0  ;;  %p56_p5 = scmp.ne.s32.totalorder %s2607_s30, %s2603_s29 }
  0x63   : > { %s2837_s21 = scalar_select %p41_p7, %s2611_s15, %s43_s22  }
  0x64   : > { %2187 = dma.hbm_to_vmem [thread:$0]  (!%p2740_p6), %s3178_s12, 1024, %s464_s18, [#allocation15], %s2620_s28, %s2620_s28, %s2621_s17  }
  0x65   : > { %3180 = sst [smem:[#allocation26_spill]] %s2837_s21  ;;  %p2839_p8 = por %p51_p2, %p50_p13 }
  0x66   : > { %p2845_p6 = por %p3158_p1, %p56_p5  ;;  %p358_p9 = scmp.eq.s32.totalorder %s2726_s19, 1 }
  0x67   : > { %p364_p10 = scmp.eq.s32.totalorder %s1787_s23, 1  ;;  %p2205_p11 = scmp.lt.s32.totalorder %s2615_s16, 2 }
  0x68   : > { %s3182_s28 = scalar_select %p2845_p6, 1, 0 }
  0x69   : > { %s480_s17 = sand.u32 1, %s2611_s15   ;;  %p2852_p12 = por %p358_p9, %p50_p13 }
  0x6a   : > { %p2856_p0 = por %p364_p10, %p56_p5  ;;  %s2860_s14 = sshll.u32 %s480_s17, 2 }
  0x6b   : > { %s3183_s18 = scalar_select %p2852_p12, 1, 0 }
  0x6c   : > { %s3184_s25 = scalar_select %p2856_p0, 1, 0 }
  0x6d   : > { %s1797_s2 = sshll.u32 %s2615_s16, 6  ;;  %s484_s23 = scalar_lea.vmem [#allocation2], %s2860_s14 }
  0x6e   : > { %3185 = sst [smem:[#allocation27_spill]] %s3184_s25  ;;  %s2866_s3 = scalar_lea.hbm %s3138_s0, %s1797_s2 }
  0x6f   : > { %s491_s4 = sshll.u32 %s484_s23, 4  ;;  %p2873_p7 = pnand %p2205_p11, %p2839_p8  ;;  %s2869_s4 = int_to_ptr.vmem [resolvable:$true] %s491_s4 }
  0x70   : > { %s2880_s24 = scalar_lea.hbm %s3139_s1, %s1797_s2  ;;  %s498_s22 = sand.u32 1, %s2615_s16  }
  0x71   : > { %s481_s21 = scalar_lea.sflag [#allocation3], %s480_s17  ;;  %s2475_s15 = scalar_lea.hbm %s2866_s3, 64 }
  0x72   : > { %p2476_p13 = scmp.ne.s32.totalorder %s2866_s3, %s2475_s15  ;;  %p2477_p2 = pneg %p2873_p7 }
  0x73   : > { %s2480_s26 = scalar_lea.hbm %s3138_s0, 128  ;;  %p2481_p9 = scmp.lt.s32.totalorder %s2866_s3, %s3138_s0 }
  0x74   : > { %p2478_p5 = pnand %p2477_p2, %p2476_p13  ;;  %p2482_p10 = scmp.lt.s32.totalorder %s2480_s26, %s2475_s15 }
  0x76   : > { %p2479_p8 = pneg %p2478_p5  ;;  %p2483_p11 = por %p2482_p10, %p2481_p9 }
  0x78   : > { %p2484_p4 = pnand %p2483_p11, %p2479_p8 }
  0x7a   : > { %2487 = shalt.err (!%p2484_p4)
}
  0x7b   : > { %s2488_s12 = scalar_lea.vmem %s2869_s4, 64  ;;  %s2625_s17 = smov [#allocation2]  }
  0x7c   : > { %p2489_p1 = scmp.ne.s32.totalorder %s2869_s4, %s2488_s12  ;;  %s2493_s2 = sshll.u32 %s2625_s17, 4  ;;  %s2494_s2 = int_to_ptr.vmem [resolvable:$false] %s2493_s2 }
  0x7d   : > { %s2495_s27 = scalar_lea.vmem %s2494_s2, 128  ;;  %p2496_p0 = scmp.lt.s32.totalorder %s2869_s4, %s2494_s2 }
  0x7e   : > { %p2491_p13 = pnand %p2489_p1, %p2477_p2  ;;  %p2497_p12 = scmp.lt.s32.totalorder %s2495_s27, %s2488_s12 }
  0x80   : > { %p2492_p5 = pneg %p2491_p13  ;;  %p2498_p6 = por %p2497_p12, %p2496_p0 }
  0x82   : > { %p2499_p9 = pnand %p2498_p6, %p2492_p5 }
  0x84   : > { %2502 = shalt.err (!%p2499_p9)
}
  0x85   : > { %2191 = dma.hbm_to_vmem [thread:$0]  (!%p2873_p7), %s2866_s3, 64, %s2869_s4, %s481_s21  }
  0x86   : > { %s502_s15 = scalar_lea.vmem [#allocation5], %s2860_s14  ;;  %s499_s25 = scalar_lea.sflag [#allocation6], %s498_s22 }
  0x87   : > { %s509_s26 = sshll.u32 %s502_s15, 4  ;;  %s2503_s23 = scalar_lea.hbm %s2880_s24, 64  ;;  %s510_s26 = int_to_ptr.vmem [resolvable:$true] %s509_s26 }
  0x88   : > { %p2504_p1 = scmp.ne.s32.totalorder %s2880_s24, %s2503_s23  ;;  %s2508_s17 = scalar_lea.hbm %s3139_s1, 128 }
  0x89   : > { %p2509_p12 = scmp.lt.s32.totalorder %s2880_s24, %s3139_s1  ;;  %p2510_p0 = scmp.lt.s32.totalorder %s2508_s17, %s2503_s23 }
  0x8a   : > { %p2506_p4 = pnand %p2504_p1, %p2477_p2 }
  0x8b   : > { %p2511_p8 = por %p2510_p0, %p2509_p12 }
  0x8c   : > { %p2507_p6 = pneg %p2506_p4 }
  0x8e   : > { %p2512_p10 = pnand %p2511_p8, %p2507_p6 }
  0x90   : > { %2515 = shalt.err (!%p2512_p10)
}
  0x91   : > { %s2516_s3 = scalar_lea.vmem %s510_s26, 64  ;;  %s2626_s4 = smov [#allocation5]  }
  0x92   : > { %p2517_p11 = scmp.ne.s32.totalorder %s510_s26, %s2516_s3  ;;  %s2521_s21 = sshll.u32 %s2626_s4, 4  ;;  %s2522_s21 = int_to_ptr.vmem [resolvable:$false] %s2521_s21 }
  0x93   : > { %s2523_s14 = scalar_lea.vmem %s2522_s21, 128  ;;  %p2524_p9 = scmp.lt.s32.totalorder %s510_s26, %s2522_s21 }
  0x94   : > { %p2519_p13 = pnand %p2517_p11, %p2477_p2  ;;  %p2525_p1 = scmp.lt.s32.totalorder %s2523_s14, %s2516_s3 }
  0x96   : > { %p2520_p5 = pneg %p2519_p13  ;;  %p2526_p4 = por %p2525_p1, %p2524_p9 }
  0x98   : > { %p2527_p3 = pnand %p2526_p4, %p2520_p5 }
  0x9a   : > { %2530 = shalt.err (!%p2527_p3)
}
  0x9b   : > { %2194 = dma.hbm_to_vmem [thread:$0]  (!%p2873_p7), %s2880_s24, 64, %s510_s26, %s499_s25  }
  0x9c   : > { %p3187_p6 = scmp.ne.s32.totalorder %s3170_s20, 0 }
  0x9d   : > { %s2931_s22 = sand.u32 (!%p3187_p6), 1, %s2607_s30   ;;  %p3188_p2 = scmp.ne.s32.totalorder (!%p3187_p6), %s3182_s28, 0 }
  0x9e   : > { %518 = sbr.rel (%p3187_p6) target bundleno = 2059 (0x80b), region = 76  ;;  %s1801_s15 = sshll.u32 (!%p3187_p6), %s2931_s22, 2 }
  0x9f   : > { %s521_s23 = scalar_lea.sflag (!%p3187_p6), [#allocation3], %s2931_s22  ;;  %s2935_s10 = scalar_lea.vmem (!%p3187_p6), [#allocation2], %s1801_s15 }
  0xa3   : > { %2574 = dma.done.wait (%p3188_p2), %s521_s23, 64  }
  0xa4   : > { %2576 = vsyncadd (%p3188_p2), %s521_s23, 4294967232  ;;  %s529_s8 = sand.u32 1, %s2726_s19   ;;  %s2942_s24 = scalar_lea.vmem [#allocation5], %s1801_s15 }
  0xa5   : > { %s530_s20 = scalar_lea.sflag [#allocation6], %s529_s8 }
  0xa6   : > { %2578 = dma.done.wait (%p3188_p2), %s530_s20, 64  }
  0xa7   : > { %2580 = vsyncadd (%p3188_p2), %s530_s20, 4294967232  ;;  %p3189_p3 = scmp.eq.s32.totalorder %s2726_s19, 0 }
  0xa9   : > { %2582 = dma.done.wait (%p3189_p3), [#allocation6], 1024   ;;  %p3190_p7 = pmov %p3189_p3 }
  0xaa   : > { %p3191_p12 = pmov %p3189_p3 }
  0xab   : > { %2584 = vsyncadd (%p3190_p7), [#allocation6], 4294966272 }
  0xac   : > { %2586 = dma.done.wait (%p3191_p12), [#allocation9], 2048   ;;  %p3192_p0 = pmov %p3189_p3 }
  0xae   : > { %2588 = vsyncadd (%p3192_p0), [#allocation9], 4294965248  ;;  %p3193_p8 = pmov %p3192_p0 }
  0xaf   : > { %p3194_p10 = pmov %p3192_p0 }
  0xb0   : > { %2590 = dma.done.wait (%p3193_p8), [#allocation12], 4096  }
  0xb1   : > { %2592 = vsyncadd (%p3194_p10), [#allocation12], 4294963200  ;;  %p3195_p11 = pmov %p3192_p0 }
  0xb2   : > { %p3196_p13 = pmov %p3192_p0 }
  0xb3   : > { %2594 = dma.done.wait (%p3195_p11), [#allocation15], 1024  }
  0xb4   : > { %2596 = vsyncadd (%p3196_p13), [#allocation15], 4294966272  ;;  %v2627_v0 = vmov 0.0   ;;  %vm2628_vm0 = vmmov 0   ;;  %v2255_v1 = vld [vmem:[#allocation7 + $0x38] sm:$0xff]   ;;  %v2256_v2 = vld [vmem:[#allocation7 + $0x30] sm:$0xff]  }
  0xb5   : > { %1961 = vmatprep.subr.bf16.mxu0 %v2627_v0  ;;  %1977 = vmatprep.mubr.msk.bf16.mxu0 %vm2628_vm0, %v2627_v0  ;;  %v2257_v3 = vld [vmem:[#allocation7 + $0x28] sm:$0xff]   ;;  %v2258_v4 = vld [vmem:[#allocation7 + $0x20] sm:$0xff]   ;;  %v2259_v5 = vld [vmem:[#allocation7 + $0x18] sm:$0xff]   ;;  %vm725_vm1 = vcmask 1043456   ;;  %vm721_vm2 = vcmask 64512   ;;  %s1880_s23 = sshll.u32 %s2726_s19, 4 }
  0xb6   : > { %1981 = vmatprep.subr.bf16.mxu1 %v2627_v0  ;;  %1983 = vmatprep.mubr.msk.bf16.mxu1 %vm2628_vm0, %v2627_v0  ;;  %v2260_v6 = vld [vmem:[#allocation7 + $0x10] sm:$0xff]   ;;  %v2261_v7 = vld [vmem:[#allocation7 + $0x8] sm:$0xff]   ;;  %v2262_v8 = vld [vmem:[#allocation7] sm:$0xff]   ;;  %s3197_s28 = sld [smem:[#allocation34_spill]]  ;;  %s1629_s25 = scalar_lea.sflag [#allocation4], %s2931_s22 }
  0xb7   : > { %1962 = vmatpush3.bf16.msra.mxu0 %v2255_v1  ;;  %v608_v9 = vld [vmem:[%s2942_s24] sm:$0xf]  ;;  %v2266_v11 = vld [vmem:[#allocation11 + $0x30] sm:$0xff]   ;;  %v2268_v12 = vld [vmem:[#allocation11 + $0x28] sm:$0xff]   ;;  %p3198_p9 = scmp.ne.s32.totalorder %s3183_s18, 0  ;;  %s2629_s19 = smov [#allocation16]  }
  0xb8   : > { %1963 = vmatprep.subr.bf16.mxu0 %v2627_v0  ;;  %v2264_v10 = vld [vmem:[#allocation11 + $0x38] sm:$0xff]   ;;  %v2270_v13 = vld [vmem:[#allocation11 + $0x20] sm:$0xff]   ;;  %v2274_v15 = vld [vmem:[#allocation11 + $0x10] sm:$0xff]   ;;  %s2535_s17 = sshll.u32 %s2629_s19, 4  ;;  %s2536_s17 = int_to_ptr.vmem [resolvable:$false] %s2535_s17 }
  0xb9   : > { %v2272_v14 = vld [vmem:[#allocation11 + $0x18] sm:$0xff]   ;;  %v2989_v21 = vld [vmem:[%s2935_s10] sm:$0xf]  ;;  %v2267_v25 = vld [vmem:[#allocation8 + $0x28] sm:$0xff]   ;;  %s605_s10 = scalar_lea.vmem [#allocation16], %s2931_s22  ;;  %s2537_s2 = scalar_lea.vmem %s2536_s17, 32 }
  0xba   : > { %v2263_v22 = vld [vmem:[#allocation8 + $0x38] sm:$0xff]   ;;  %v2265_v24 = vld [vmem:[#allocation8 + $0x30] sm:$0xff]   ;;  %v2269_v26 = vld [vmem:[#allocation8 + $0x20] sm:$0xff]   ;;  %s1641_s8 = sshll.u32 %s605_s10, 4  ;;  %s3097_s8 = int_to_ptr.vmem [resolvable:$true] %s1641_s8 }
  0xbb   : > { %1964 = vmatpush3.bf16.msra.mxu0 %v2256_v2  ;;  %v2271_v27 = vld [vmem:[#allocation8 + $0x18] sm:$0xff]   ;;  %v2273_v28 = vld [vmem:[#allocation8 + $0x10] sm:$0xff]   ;;  %v2275_v29 = vld [vmem:[#allocation8 + $0x8] sm:$0xff]   ;;  %s2531_s12 = scalar_lea.vmem %s3097_s8, 16  ;;  %p2538_p6 = scmp.lt.s32.totalorder %s3097_s8, %s2536_s17 }
  0xbc   : > { %1965 = vmatprep.subr.bf16.mxu0 %v2627_v0  ;;  %v2276_v30 = vld [vmem:[#allocation11 + $0x8] sm:$0xff]   ;;  %v2277_v31 = vld [vmem:[#allocation8] sm:$0xff]   ;;  %v1817_v33 = vld [vmem:[%s3143_s5] ss:$0 sm:$0xff]  ;;  %s3095_s26 = scalar_lea.hbm %s3197_s28, %s1880_s23  ;;  %p2532_p5 = scmp.ne.s32.totalorder %s3097_s8, %s2531_s12 }
  0xbd   : > { %v2278_v32 = vld [vmem:[#allocation11] sm:$0xff]   ;;  %v2279_v49 = vld [vmem:[#allocation11 + $0x78] sm:$0xff]   ;;  %v2280_v52 = vld [vmem:[#allocation11 + $0x70] sm:$0xff]   ;;  %p2539_p2 = scmp.lt.s32.totalorder %s2537_s2, %s2531_s12 }
  0xbe   : > { %v2281_v53 = vld [vmem:[#allocation11 + $0x68] sm:$0xff]   ;;  %v2282_v54 = vld [vmem:[#allocation11 + $0x60] sm:$0xff]   ;;  %v2283_v55 = vld [vmem:[#allocation11 + $0x58] sm:$0xff]   ;;  %p2533_p1 = pnand %p2532_p5, %p3198_p9 }
  0xbf   : > { %1966 = vmatpush3.bf16.msra.mxu0 %v2257_v3  ;;  %v2284_v56 = vld [vmem:[#allocation11 + $0x50] sm:$0xff]   ;;  %v2285_v57 = vld [vmem:[#allocation11 + $0x48] sm:$0xff]   ;;  %v2286_v58 = vld [vmem:[#allocation11 + $0x40] sm:$0xff]   ;;  %p2540_p3 = por %p2539_p2, %p2538_p6 }
  0xc0   : > { %1967 = vmatprep.subr.bf16.mxu0 %v2627_v0  ;;  %v1827_v59 = vld [vmem:[%s3144_s6] ss:$0 sm:$0xff]  ;;  %v2287_v2 = vld [vmem:[#allocation10 + $0x38] sm:$0xff]   ;;  %p2534_p4 = pneg %p2533_p1 }
  0xc2   : > { %p2541_p7 = pnand %p2540_p3, %p2534_p4 }
  0xc3   : > { %1968 = vmatpush3.bf16.msra.mxu0 %v2258_v4 }
  0xc4   : > { %1969 = vmatprep.subr.bf16.mxu0 %v2627_v0 }
  0xc7   : > { %1970 = vmatpush3.bf16.msra.mxu0 %v2259_v5  ;;  %v2288_v5 = vld [vmem:[#allocation10 + $0x30] sm:$0xff]  }
  0xc8   : > { %1971 = vmatprep.subr.bf16.mxu0 %v2627_v0 }
  0xcb   : > { %1972 = vmatpush3.bf16.msra.mxu0 %v2260_v6  ;;  %v2289_v6 = vld [vmem:[#allocation10 + $0x28] sm:$0xff]  }
  0xcc   : > { %1973 = vmatprep.subr.bf16.mxu0 %v2627_v0 }
  0xcf   : > { %1974 = vmatpush3.bf16.msra.mxu0 %v2261_v7  ;;  %v2290_v7 = vld [vmem:[#allocation10 + $0x20] sm:$0xff]  }
  0xd0   : > { %1975 = vmatprep.subr.bf16.mxu0 %v2627_v0 }
  0xd3   : > { %1976 = vmatpush3.bf16.msra.mxu0 %v2262_v8  ;;  %v2291_v8 = vld [vmem:[#allocation10 + $0x18] sm:$0xff]  }
  0xd4   : > { %2033 = vmatprep.subr.bf16.mxu0 %v2627_v0 }
  0xd6   : > { %1978 = vmatmul.mubr.bf16.vlgmr.msra.gmra.mxu0 %v608_v9  ;;  %v2292_v9 = vld [vmem:[#allocation10 + $0x10] sm:$0xff]  }
  0xd7   : > { %2049 = vmatprep.mubr.msk.bf16.mxu0 %vm2628_vm0, %v2627_v0  ;;  %2034 = vmatpush3.bf16.msra.mxu0 %v2264_v10  ;;  %v2293_v10 = vld [vmem:[#allocation10 + $0x8] sm:$0xff]  }
  0xd8   : > { %2035 = vmatprep.subr.bf16.mxu0 %v2627_v0 }
  0xdb   : > { %2036 = vmatpush3.bf16.msra.mxu0 %v2266_v11  ;;  %v2294_v11 = vld [vmem:[#allocation10] sm:$0xff]  }
  0xdc   : > { %2037 = vmatprep.subr.bf16.mxu0 %v2627_v0 }
  0xdf   : > { %2038 = vmatpush3.bf16.msra.mxu0 %v2268_v12 }
  0xe0   : > { %2039 = vmatprep.subr.bf16.mxu0 %v2627_v0 }
  0xe3   : > { %2040 = vmatpush3.bf16.msra.mxu0 %v2270_v13 }
  0xe4   : > { %2041 = vmatprep.subr.bf16.mxu0 %v2627_v0 }
  0xe7   : > { %2042 = vmatpush3.bf16.msra.mxu0 %v2272_v14 }
  0xe8   : > { %2043 = vmatprep.subr.bf16.mxu0 %v2627_v0 }
  0xeb   : > { %2044 = vmatpush3.bf16.msra.mxu0 %v2274_v15 }
  0xec   : > { %2045 = vmatprep.subr.bf16.mxu0 %v2627_v0 }
  0xef   : > { %2046 = vmatpush3.bf16.msra.mxu0 %v2276_v30  ;;  %v2303_v30 = vld [vmem:[#allocation13 + $0x38] sm:$0xff]  }
  0xf0   : > { %2047 = vmatprep.subr.bf16.mxu0 %v2627_v0 }
  0xf3   : > { %2048 = vmatpush3.bf16.msra.mxu0 %v2278_v32  ;;  %v2305_v32 = vld [vmem:[#allocation13 + $0x28] sm:$0xff]  }
  0xf4   : > { %2073 = vmatprep.subr.bf16.mxu0 %v2627_v0 }
 0x196   : > { %v707_v16 = vpop.f32.mrf.mxu0 }
 0x197   : > { %v713_v17 = vpack.c.bf16 %v707_v16, %v707_v16 }
 0x198   : > { %v1979_v18 = vpop.f32.mrf.mxu0 }
 0x199   : > { %v727_v19 = vsel %vm725_vm1, %v713_v17, 0 }
 0x19a   : > { %v710_v20 = vpop.f32.mrf.mxu0  ;;  %1982 = vmatpush3.bf16.msra.mxu1 %v727_v19 }
 0x19b   : > { %1987 = vmatprep.subr.bf16.mxu1 %v2627_v0 }
 0x19c   : > { %v1980_v23 = vpop.f32.mrf.mxu0 }
 0x19d   : > { %1984 = vmatmul.mubr.msk.bf16.vlgmr.msra.gmra.mxu1 %vm721_vm2, %v2989_v21 }
 0x19e   : > { %1988 = vmatpush3.bf16.msra.mxu1 %v2263_v22  ;;  %2003 = vmatprep.mubr.msk.bf16.mxu1 %vm2628_vm0, %v2627_v0  ;;  %v2295_v22 = vld [vmem:[#allocation11 + $0xb8] sm:$0xff]  }
 0x19f   : > { %1989 = vmatprep.subr.bf16.mxu1 %v2627_v0 }
 0x1a2   : > { %1990 = vmatpush3.bf16.msra.mxu1 %v2265_v24  ;;  %v2296_v24 = vld [vmem:[#allocation11 + $0xb0] sm:$0xff]  }
 0x1a3   : > { %1991 = vmatprep.subr.bf16.mxu1 %v2627_v0 }
 0x1a6   : > { %1992 = vmatpush3.bf16.msra.mxu1 %v2267_v25  ;;  %v2297_v25 = vld [vmem:[#allocation11 + $0xa8] sm:$0xff]  }
 0x1a7   : > { %1993 = vmatprep.subr.bf16.mxu1 %v2627_v0 }
 0x1aa   : > { %1994 = vmatpush3.bf16.msra.mxu1 %v2269_v26  ;;  %v2298_v26 = vld [vmem:[#allocation11 + $0xa0] sm:$0xff]  }
 0x1ab   : > { %1995 = vmatprep.subr.bf16.mxu1 %v2627_v0 }
 0x1ae   : > { %1996 = vmatpush3.bf16.msra.mxu1 %v2271_v27  ;;  %v2299_v27 = vld [vmem:[#allocation11 + $0x98] sm:$0xff]  }
 0x1af   : > { %1997 = vmatprep.subr.bf16.mxu1 %v2627_v0 }
 0x1b2   : > { %1998 = vmatpush3.bf16.msra.mxu1 %v2273_v28  ;;  %v2301_v28 = vld [vmem:[#allocation11 + $0x88] sm:$0xff]  }
 0x1b3   : > { %1999 = vmatprep.subr.bf16.mxu1 %v2627_v0 }
 0x1b6   : > { %2000 = vmatpush3.bf16.msra.mxu1 %v2275_v29  ;;  %v2302_v29 = vld [vmem:[#allocation11 + $0x80] sm:$0xff]  }
 0x1b7   : > { %2001 = vmatprep.subr.bf16.mxu1 %v2627_v0 }
 0x1ba   : > { %2002 = vmatpush3.bf16.msra.mxu1 %v2277_v31  ;;  %v2304_v31 = vld [vmem:[#allocation13 + $0x30] sm:$0xff]  }
 0x1bb   : > { %2007 = vmatprep.subr.bf16.mxu1 %v2627_v0 }
 0x25d   : > { %v763_v34 = vpop.f32.mrf.mxu1 }
 0x25e   : > { %v764_v35 = vadd.f32 %v1817_v33, %v763_v34  ;;  %v1853_v33 = vld [vmem:[%s3145_s7] ss:$0 sm:$0xff] }
 0x25f   : > { %v1985_v36 = vpop.f32.mrf.mxu1 }
 0x260   : > { %v769_v37 = vmax.f32 %v764_v35, 0.0 }
 0x261   : > { %v766_v38 = vpop.f32.mrf.mxu1 }
 0x262   : > { %v770_v39 = vpack.c.bf16 %v769_v37, %v769_v37 }
 0x263   : > { %v1986_v40 = vpop.f32.mrf.mxu1 }
 0x264   : > { %2004 = vmatmul.mubr.bf16.vlgmr.msra.gmra.mxu1 %v770_v39  ;;  %2050 = vmatmul.mubr.bf16.vlgmr.msra.gmra.mxu0 %v770_v39 }
 0x265   : > { %2009 = vmatprep.mubr.msk.bf16.mxu1 %vm2628_vm0, %v2627_v0  ;;  %2075 = vmatprep.mubr.msk.bf16.mxu0 %vm2628_vm0, %v2627_v0 }
 0x324   : > { %v885_v41 = vpop.f32.mrf.mxu1  ;;  %v3013_v42 = vpop.f32.mrf.mxu0 }
 0x325   : > { %v891_v43 = vpack.c.bf16 %v885_v41, %v885_v41  ;;  %v2306_v41 = vld [vmem:[#allocation13 + $0x20] sm:$0xff]  }
 0x326   : > { %v2005_v44 = vpop.f32.mrf.mxu1  ;;  %v2051_v45 = vpop.f32.mrf.mxu0 }
 0x327   : > { %v900_v46 = vsel %vm725_vm1, %v891_v43, 0  ;;  %v2307_v43 = vld [vmem:[#allocation13 + $0x18] sm:$0xff]   ;;  %v2308_v44 = vld [vmem:[#allocation13 + $0x10] sm:$0xff]   ;;  %v2309_v45 = vld [vmem:[#allocation13 + $0x8] sm:$0xff]  }
 0x328   : > { %v888_v47 = vpop.f32.mrf.mxu1  ;;  %2008 = vmatpush3.bf16.msra.mxu1 %v900_v46  ;;  %v1134_v48 = vpop.f32.mrf.mxu0  ;;  %v2310_v46 = vld [vmem:[#allocation13] sm:$0xff]  }
 0x329   : > { %2013 = vmatprep.subr.bf16.mxu1 %v2627_v0  ;;  %v2311_v47 = vld [vmem:[#allocation14 + $0x38] sm:$0xff]   ;;  %v2312_v48 = vld [vmem:[#allocation14 + $0x30] sm:$0xff]  }
 0x32a   : > { %v2006_v50 = vpop.f32.mrf.mxu1  ;;  %v2052_v51 = vpop.f32.mrf.mxu0 }
 0x32b   : > { %2010 = vmatmul.mubr.msk.bf16.vlgmr.msra.gmra.mxu1 %vm721_vm2, %v2989_v21  ;;  %v2314_v50 = vld [vmem:[#allocation14 + $0x20] sm:$0xff]   ;;  %v2315_v51 = vld [vmem:[#allocation14 + $0x18] sm:$0xff]  }
 0x32c   : > { %2014 = vmatpush3.bf16.msra.mxu1 %v2279_v49  ;;  %2029 = vmatprep.mubr.msk.bf16.mxu1 %vm2628_vm0, %v2627_v0  ;;  %v2313_v49 = vld [vmem:[#allocation14 + $0x28] sm:$0xff]  }
 0x32d   : > { %2015 = vmatprep.subr.bf16.mxu1 %v2627_v0 }
 0x330   : > { %2016 = vmatpush3.bf16.msra.mxu1 %v2280_v52  ;;  %v2316_v52 = vld [vmem:[#allocation14 + $0x10] sm:$0xff]  }
 0x331   : > { %2017 = vmatprep.subr.bf16.mxu1 %v2627_v0 }
 0x334   : > { %2018 = vmatpush3.bf16.msra.mxu1 %v2281_v53 }
 0x335   : > { %2019 = vmatprep.subr.bf16.mxu1 %v2627_v0 }
 0x338   : > { %2020 = vmatpush3.bf16.msra.mxu1 %v2282_v54 }
 0x339   : > { %2021 = vmatprep.subr.bf16.mxu1 %v2627_v0 }
 0x33c   : > { %2022 = vmatpush3.bf16.msra.mxu1 %v2283_v55  ;;  %v1863_v55 = vld [vmem:[%s3147_s9] ss:$0 sm:$0xff] }
 0x33d   : > { %2023 = vmatprep.subr.bf16.mxu1 %v2627_v0 }
 0x340   : > { %2024 = vmatpush3.bf16.msra.mxu1 %v2284_v56 }
 0x341   : > { %2025 = vmatprep.subr.bf16.mxu1 %v2627_v0 }
 0x344   : > { %2026 = vmatpush3.bf16.msra.mxu1 %v2285_v57 }
 0x345   : > { %2027 = vmatprep.subr.bf16.mxu1 %v2627_v0 }
 0x348   : > { %2028 = vmatpush3.bf16.msra.mxu1 %v2286_v58 }
 0x349   : > { %2053 = vmatprep.subr.bf16.mxu1 %v2627_v0 }
 0x3eb   : > { %v936_v60 = vpop.f32.mrf.mxu1 }
 0x3ec   : > { %v937_v61 = vadd.f32 %v1827_v59, %v936_v60 }
 0x3ed   : > { %v2011_v62 = vpop.f32.mrf.mxu1 }
 0x3ee   : > { %v942_v63 = vmax.f32 %v937_v61, 0.0 }
 0x3ef   : > { %v939_v1 = vpop.f32.mrf.mxu1 }
 0x3f0   : > { %v943_v3 = vpack.c.bf16 %v942_v63, %v942_v63 }
 0x3f1   : > { %v2012_v4 = vpop.f32.mrf.mxu1 }
 0x3f2   : > { %2030 = vmatmul.mubr.bf16.vlgmr.msra.gmra.mxu1 %v943_v3 }
 0x3f3   : > { %2054 = vmatpush3.bf16.msra.mxu1 %v2287_v2  ;;  %2069 = vmatprep.mubr.msk.bf16.mxu1 %vm2628_vm0, %v2627_v0 }
 0x3f4   : > { %2055 = vmatprep.subr.bf16.mxu1 %v2627_v0 }
 0x3f7   : > { %2056 = vmatpush3.bf16.msra.mxu1 %v2288_v5  ;;  %v2318_v5 = vld [vmem:[#allocation14] sm:$0xff]  }
 0x3f8   : > { %2057 = vmatprep.subr.bf16.mxu1 %v2627_v0 }
 0x3fb   : > { %2058 = vmatpush3.bf16.msra.mxu1 %v2289_v6  ;;  %v1431_v6 = vld [vmem:[%s3149_s11] sm:$0x1] }
 0x3fc   : > { %2059 = vmatprep.subr.bf16.mxu1 %v2627_v0 }
 0x3ff   : > { %2060 = vmatpush3.bf16.msra.mxu1 %v2290_v7 }
 0x400   : > { %2061 = vmatprep.subr.bf16.mxu1 %v2627_v0 }
 0x403   : > { %2062 = vmatpush3.bf16.msra.mxu1 %v2291_v8 }
 0x404   : > { %2063 = vmatprep.subr.bf16.mxu1 %v2627_v0 }
 0x407   : > { %2064 = vmatpush3.bf16.msra.mxu1 %v2292_v9 }
 0x408   : > { %2065 = vmatprep.subr.bf16.mxu1 %v2627_v0 }
 0x40b   : > { %2066 = vmatpush3.bf16.msra.mxu1 %v2293_v10 }
 0x40c   : > { %2067 = vmatprep.subr.bf16.mxu1 %v2627_v0 }
 0x40f   : > { %2068 = vmatpush3.bf16.msra.mxu1 %v2294_v11 }
 0x410   : > { %2099 = vmatprep.subr.bf16.mxu1 %v2627_v0 }
 0x412   : > { %2070 = vmatmul.mubr.bf16.vlgmr.msra.gmra.mxu1 %v943_v3 }
 0x413   : > { %2115 = vmatprep.mubr.msk.bf16.mxu1 %vm2628_vm0, %v2627_v0  ;;  %2100 = vmatpush3.bf16.msra.mxu1 %v2303_v30 }
 0x414   : > { %2101 = vmatprep.subr.bf16.mxu1 %v2627_v0 }
 0x417   : > { %2102 = vmatpush3.bf16.msra.mxu1 %v2304_v31 }
 0x418   : > { %2103 = vmatprep.subr.bf16.mxu1 %v2627_v0 }
 0x41b   : > { %2104 = vmatpush3.bf16.msra.mxu1 %v2305_v32 }
 0x41c   : > { %2105 = vmatprep.subr.bf16.mxu1 %v2627_v0 }
 0x41f   : > { %2106 = vmatpush3.bf16.msra.mxu1 %v2306_v41 }
 0x420   : > { %2107 = vmatprep.subr.bf16.mxu1 %v2627_v0 }
 0x423   : > { %2108 = vmatpush3.bf16.msra.mxu1 %v2307_v43 }
 0x424   : > { %2109 = vmatprep.subr.bf16.mxu1 %v2627_v0 }
 0x427   : > { %2110 = vmatpush3.bf16.msra.mxu1 %v2308_v44 }
 0x428   : > { %2111 = vmatprep.subr.bf16.mxu1 %v2627_v0 }
 0x42b   : > { %2112 = vmatpush3.bf16.msra.mxu1 %v2309_v45 }
 0x42c   : > { %2113 = vmatprep.subr.bf16.mxu1 %v2627_v0 }
 0x42f   : > { %2114 = vmatpush3.bf16.msra.mxu1 %v2310_v46 }
 0x4b2   : > { %v3044_v12 = vpop.f32.mrf.mxu1 }
 0x4b3   : > { %v1132_v53 = vadd.f32 %v3013_v42, %v3044_v12  ;;  %v2317_v42 = vld [vmem:[#allocation14 + $0x8] sm:$0xff]  }
 0x4b4   : > { %v2031_v13 = vpop.f32.mrf.mxu1 }
 0x4b6   : > { %v1046_v14 = vpop.f32.mrf.mxu1 }
 0x4b8   : > { %v2032_v15 = vpop.f32.mrf.mxu1 }
 0x4d2   : > { %v1235_v16 = vpop.f32.mrf.mxu1 }
 0x4d3   : > { %v1241_v17 = vpack.c.bf16 %v1235_v16, %v1235_v16 }
 0x4d4   : > { %v2071_v18 = vpop.f32.mrf.mxu1 }
 0x4d5   : > { %v1250_v19 = vsel %vm725_vm1, %v1241_v17, 0 }
 0x4d6   : > { %v1238_v20 = vpop.f32.mrf.mxu1  ;;  %2074 = vmatpush3.bf16.msra.mxu0 %v1250_v19 }
 0x4d7   : > { %2079 = vmatprep.subr.bf16.mxu0 %v2627_v0 }
 0x4d8   : > { %v2072_v23 = vpop.f32.mrf.mxu1 }
 0x4d9   : > { %2076 = vmatmul.mubr.msk.bf16.vlgmr.msra.gmra.mxu0 %vm721_vm2, %v2989_v21  ;;  %v2300_v21 = vld [vmem:[#allocation11 + $0x90] sm:$0xff]  }
 0x4da   : > { %2080 = vmatpush3.bf16.msra.mxu0 %v2295_v22  ;;  %2095 = vmatprep.mubr.msk.bf16.mxu0 %vm2628_vm0, %v2627_v0 }
 0x4db   : > { %2081 = vmatprep.subr.bf16.mxu0 %v2627_v0 }
 0x4de   : > { %2082 = vmatpush3.bf16.msra.mxu0 %v2296_v24 }
 0x4df   : > { %2083 = vmatprep.subr.bf16.mxu0 %v2627_v0 }
 0x4e2   : > { %2084 = vmatpush3.bf16.msra.mxu0 %v2297_v25 }
 0x4e3   : > { %2085 = vmatprep.subr.bf16.mxu0 %v2627_v0 }
 0x4e6   : > { %2086 = vmatpush3.bf16.msra.mxu0 %v2298_v26 }
 0x4e7   : > { %2087 = vmatprep.subr.bf16.mxu0 %v2627_v0 }
 0x4ea   : > { %2088 = vmatpush3.bf16.msra.mxu0 %v2299_v27 }
 0x4eb   : > { %2089 = vmatprep.subr.bf16.mxu0 %v2627_v0 }
 0x4ee   : > { %2090 = vmatpush3.bf16.msra.mxu0 %v2300_v21 }
 0x4ef   : > { %2091 = vmatprep.subr.bf16.mxu0 %v2627_v0 }
 0x4f2   : > { %2092 = vmatpush3.bf16.msra.mxu0 %v2301_v28 }
 0x4f3   : > { %2093 = vmatprep.subr.bf16.mxu0 %v2627_v0 }
 0x4f6   : > { %2094 = vmatpush3.bf16.msra.mxu0 %v2302_v29 }
 0x4f7   : > { %2119 = vmatprep.subr.bf16.mxu0 %v2627_v0 }
 0x599   : > { %v1286_v34 = vpop.f32.mrf.mxu0 }
 0x59a   : > { %v1287_v35 = vadd.f32 %v1853_v33, %v1286_v34 }
 0x59b   : > { %v2077_v36 = vpop.f32.mrf.mxu0 }
 0x59c   : > { %v1292_v37 = vmax.f32 %v1287_v35, 0.0 }
 0x59d   : > { %v1289_v38 = vpop.f32.mrf.mxu0 }
 0x59e   : > { %v1293_v39 = vpack.c.bf16 %v1292_v37, %v1292_v37 }
 0x59f   : > { %v2078_v40 = vpop.f32.mrf.mxu0 }
 0x5a0   : > { %2096 = vmatmul.mubr.bf16.vlgmr.msra.gmra.mxu0 %v1293_v39 }
 0x5a1   : > { %2135 = vmatprep.mubr.msk.bf16.mxu0 %vm2628_vm0, %v2627_v0  ;;  %2120 = vmatpush3.bf16.msra.mxu0 %v2311_v47 }
 0x5a2   : > { %2121 = vmatprep.subr.bf16.mxu0 %v2627_v0 }
 0x5a5   : > { %2122 = vmatpush3.bf16.msra.mxu0 %v2312_v48 }
 0x5a6   : > { %2123 = vmatprep.subr.bf16.mxu0 %v2627_v0 }
 0x5a9   : > { %2124 = vmatpush3.bf16.msra.mxu0 %v2313_v49 }
 0x5aa   : > { %2125 = vmatprep.subr.bf16.mxu0 %v2627_v0 }
 0x5ad   : > { %2126 = vmatpush3.bf16.msra.mxu0 %v2314_v50 }
 0x5ae   : > { %2127 = vmatprep.subr.bf16.mxu0 %v2627_v0 }
 0x5b1   : > { %2128 = vmatpush3.bf16.msra.mxu0 %v2315_v51 }
 0x5b2   : > { %2129 = vmatprep.subr.bf16.mxu0 %v2627_v0 }
 0x5b5   : > { %2130 = vmatpush3.bf16.msra.mxu0 %v2316_v52 }
 0x5b6   : > { %2131 = vmatprep.subr.bf16.mxu0 %v2627_v0 }
 0x5b9   : > { %2132 = vmatpush3.bf16.msra.mxu0 %v2317_v42 }
 0x5ba   : > { %2133 = vmatprep.subr.bf16.mxu0 %v2627_v0  ;;  %v1538_v0 = vld [vmem:[%s3151_s13] sm:$0x1] }
 0x5bd   : > { %2134 = vmatpush3.bf16.msra.mxu0 %v2318_v5 }
 0x660   : > { %v1393_v54 = vpop.f32.mrf.mxu0 }
 0x661   : > { %v1399_v56 = vadd.f32 %v1393_v54, %v1132_v53 }
 0x662   : > { %v2097_v57 = vpop.f32.mrf.mxu0 }
 0x663   : > { %v1407_v58 = vadd.f32 %v1863_v55, %v1399_v56 }
 0x664   : > { %v1396_v59 = vpop.f32.mrf.mxu0 }
 0x665   : > { %v1408_v60 = vrot.slane %v1407_v58, 4 }
 0x666   : > { %v2098_v61 = vpop.f32.mrf.mxu0 }
 0x667   : > { %v1409_v62 = vadd.f32 %v1408_v60, %v1407_v58 }
 0x669   : > { %v1410_v63 = vrot.slane %v1409_v62, 2 }
 0x66b   : > { %v1411_v1 = vadd.f32 %v1410_v63, %v1409_v62 }
 0x66d   : > { %v1412_v2 = vrot.slane %v1411_v1, 1 }
 0x66f   : > { %v1413_v3 = vadd.f32 %v1412_v2, %v1411_v1 }
 0x671   : > { %v1414_v4 = vpack.c.bf16 %v1413_v3, %v1413_v3 }
 0x673   : > { %2116 = vmatmul.mubr.bf16.vlgmr.msra.gmra.mxu1 %v1414_v4 }
 0x733   : > { %v1514_v7 = vpop.f32.mrf.mxu1 }
 0x734   : > { %v1515_v8 = vadd.f32 %v1514_v7, %v1431_v6 }
 0x735   : > { %v2117_v9 = vpop.f32.mrf.mxu1 }
 0x736   : > { %v1520_v10 = vmax.f32 %v1515_v8, 0.0 }
 0x737   : > { %v1517_v11 = vpop.f32.mrf.mxu1 }
 0x738   : > { %v1521_v12 = vpack.c.bf16 %v1520_v10, %v1520_v10 }
 0x739   : > { %v2118_v13 = vpop.f32.mrf.mxu1 }
 0x73a   : > { %2136 = vmatmul.mubr.bf16.vlgmr.msra.gmra.mxu0 %v1521_v12 }
 0x7fa   : > { %v1621_v14 = vpop.f32.mrf.mxu0 }
 0x7fb   : > { %v1622_v15 = vadd.f32 %v1621_v14, %v1538_v0 }
 0x7fc   : > { %v2137_v16 = vpop.f32.mrf.mxu0 }
 0x7fd   : > { %1627 = vst [vmem:[%s605_s10] sm:$0x1] %v1622_v15 }
 0x7fe   : > { %v1624_v17 = vpop.f32.mrf.mxu0 }
 0x7ff   : > { %2544 = shalt.err (!%p2541_p7)
}
 0x800   : > { %s2545_s27 = scalar_lea.hbm %s3095_s26, 16  ;;  %s2549_s4 = scalar_lea.hbm %s3197_s28, 32 }
 0x801   : > { %p2546_p12 = scmp.ne.s32.totalorder %s3095_s26, %s2545_s27  ;;  %p2550_p10 = scmp.lt.s32.totalorder %s3095_s26, %s3197_s28 }
 0x802   : > { %p2551_p11 = scmp.lt.s32.totalorder %s2549_s4, %s2545_s27 }
 0x803   : > { %p2547_p0 = pnand %p2546_p12, %p3198_p9 }
 0x804   : > { %p2552_p13 = por %p2551_p11, %p2550_p10 }
 0x805   : > { %p2548_p8 = pneg %p2547_p0 }
 0x807   : > { %p2553_p5 = pnand %p2552_p13, %p2548_p8 }
 0x809   : > { %2556 = shalt.err (!%p2553_p5)
}
 0x80a   : > { %2167 = dma.vmem_to_hbm [thread:$0]  (%p3198_p9), %s3097_s8, 16, %s3095_s26, %s1629_s25   ;;  %v2138_v18 = vpop.f32.mrf.mxu0 }
 0x80b PF: > { %s3199_s15 = sld [smem:[#allocation27_spill]]  ;;  %s1653_s23 = sand.u32 1, %s2603_s29  }
 0x80c   : > { %p3201_p4 = scmp.ge.s32.totalorder %s2615_s16, 2  ;;  %s1654_s10 = scalar_lea.sflag [#allocation4], %s1653_s23 }
 0x811   : > { %p3200_p1 = scmp.ne.s32.totalorder %s3199_s15, 0 }
 0x813   : > { %p2196_p6 = pnand %p3201_p4, %p3200_p1 }
 0x815   : > { %p2197_p2 = pneg %p2196_p6 }
 0x817   : > { %2598 = dma.done.wait (%p2197_p2), %s1654_s10, 16  }
 0x818   : > { %2600 = vsyncadd (%p2197_p2), %s1654_s10, 4294967280  ;;  %s3202_s16 = sld [smem:[#allocation25_spill]]  ;;  %s3205_s29 = smov %s2607_s30 }
 0x819   : > { %s3203_s20 = sld [smem:[#allocation24_spill]] }
 0x81a   : > { %s3204_s15 = sld [smem:[#allocation26_spill]] }
 0x81e   : > { %p33_p3 = scmp.ge.s32.totalorder %s3202_s16, 4  }
 0x81f   : > { %s3206_s30 = smov %s3203_s20 }
 0x820   :  { %35 = sbr.rel (!%p33_p3) target bundleno = 18 (0x12), region = 160 }
 0x825   :  { %1658 = vsyncpa [#allocation3], 1 }
 0x826   :  { %1660 = vsyncpa [#allocation3 + $0x1], 1 }
 0x827   :  { %1661 = vsyncpa [#allocation6], 1 }
 0x828   :  { %1663 = vsyncpa [#allocation6 + $0x1], 1 }
 0x829   :  { %1664 = vsyncpa [#allocation9], 1 }
 0x82a   :  { %1665 = vsyncpa [#allocation12], 1 }
 0x82b   :  { %1666 = vsyncpa [#allocation15], 1 }
 0x82c   :  { %1667 = vsyncpa [#allocation4], 1 }
 0x82d   :  { %1669 = vsyncpa [#allocation4 + $0x1], 1 }

</bundles_post_ra>
